<compile_context>
chip_gen: v5e
topology: v5e:2x2
jax: 0.10.0
libtpu: 0.0.40
codegen_flags: <defaults>
</compile_context>

<pallas_src>
import math
import numpy as np
import jax
import jax.numpy as jnp
from jax import lax
from jax.experimental import pallas as pl
from jax.experimental.pallas import tpu as pltpu


def build_pos_enc(max_len: int, d_model: int) -> jnp.ndarray:
    """Standard sinusoidal positional encoding, identical to the PyTorch code."""
    pe = np.zeros((max_len, d_model), dtype=np.float32)
    position = np.arange(0, max_len, dtype=np.float32)[:, None]
    div_term = np.exp(
        np.arange(0, d_model, 2, dtype=np.float32) * (-np.log(10000.0) / d_model)
    )
    pe[:, 0::2] = np.sin(position * div_term)
    pe[:, 1::2] = np.cos(position * div_term)
    return jnp.asarray(pe)


def _lcm(a: int, b: int) -> int:
    return a * b // math.gcd(a, b)


def _pae_kernel(x_ref, wxt_ref, peb_ref, o_ref):
    # x_ref  : (tile_m, D)  f32 rows = collapsed (agent, time); bf16 cast on VPU.
    # wxt_ref: (D, D)       bf16, canonical (K, N) layout (pre-transposed wrapper-side).
    # peb_ref: (tile_m, D)  f32, precomputed pe @ Wp.T + b replicated over the tile's agents.
    # o_ref  : (tile_m, D)  output dtype.
    y = jnp.dot(
        x_ref[...].astype(jnp.bfloat16), wxt_ref[...],
        preferred_element_type=jnp.float32,          # f32 MXU accumulation
    )
    o_ref[...] = (y + peb_ref[...]).astype(o_ref.dtype)   # f32 epilogue add


def positional_agent_encoding(x, pe, fc_weight, fc_bias, t_offset=0,
                              target_rows=1024, out_dtype=None):
    """
    x          : (num_a, num_t, d_model) float32
    pe         : (max_t_len, d_model)    sinusoidal table
    fc_weight  : (d_model, 2*d_model)    PyTorch Linear [out, in] layout
    fc_bias    : (d_model,)
    t_offset   : static Python int (matches the PyTorch static slice)
    target_rows: row-tile target (mem-bound kernel; ~1024 rows keeps per-step
                 overhead negligible and stays far under VMEM limits for D<=1024)
    out_dtype  : defaults to x.dtype (f32 parity); pass jnp.bfloat16 to halve
                 output-side HBM writeback if the consumer accepts bf16.
    Returns    : (num_a, num_t, d_model)
    """
    if not isinstance(t_offset, int):
        raise TypeError("t_offset must be a static Python int")
    num_a, num_t, d_model = x.shape
    out_dtype = x.dtype if out_dtype is None else out_dtype

    # Static slice, matching pe[t_offset:t_offset+num_t].
    pe_slice = pe[t_offset:t_offset + num_t, :]

    # Split the Linear: Wx applies to x, Wp to the positional term.
    wx = fc_weight[:, :d_model]
    wp = fc_weight[:, d_model:]
    # Agent-invariant term, hoisted out of the kernel: pe @ Wp.T + b  -> (T, D) f32.
    pe_bias = lax.dot_general(
        pe_slice, wp, dimension_numbers=(((1,), (1,)), ((), ())),
        preferred_element_type=jnp.float32,
    ) + fc_bias
    # Canonical (K, N) weight layout for the MXU; one-time tiny transpose + bf16 cast.
    wx_t = wx.T.astype(jnp.bfloat16)

    # Collapse (agents, time) into one row axis; contiguous reshape -> no copy.
    rows = num_a * num_t
    x_rows = x.reshape(rows, d_model)

    # Row tile: multiple of lcm(num_t, 8) (sublane-aligned, whole agents), as
    # close to target_rows as possible, capped so the grid keeps >= 2 steps
    # (v7x has 2 TensorCores per chip).
    align = _lcm(num_t, 8)
    if rows <= align:
        tile_m = rows                                   # single full-extent block
    else:
        tile_m = max(align, (min(target_rows, rows) // align) * align)
        two_step_cap = ((rows // 2) // align) * align
        if two_step_cap >= align:
            tile_m = min(tile_m, two_step_cap)
    # TODO(synk): extremely long num_t (>~4k) would need time-axis tiling to
    # bound VMEM; not needed at trajectory-scale num_t.

    agents_per_tile = tile_m // num_t
    # Positional term replicated to one row tile (constant index map -> DMA'd once).
    pe_tile = jnp.tile(pe_bias, (agents_per_tile, 1))   # (tile_m, d_model) f32

    grid = (pl.cdiv(rows, tile_m),)
    out = pl.pallas_call(
        _pae_kernel,
        out_shape=jax.ShapeDtypeStruct((rows, d_model), out_dtype),
        grid_spec=pltpu.PrefetchScalarGridSpec(
            num_scalar_prefetch=0,
            grid=grid,
            in_specs=[
                pl.BlockSpec((tile_m, d_model), lambda i: (i, 0)),   # x rows (f32)
                # Grid-invariant blocks (constant index maps) are fetched once.
                # TODO(synk): pipeline_mode=pl.Buffered(1) would single-buffer
                # these two and free a little VMEM; left at default for portability.
                pl.BlockSpec((d_model, d_model), lambda i: (0, 0)),  # Wx.T (bf16)
                pl.BlockSpec((tile_m, d_model), lambda i: (0, 0)),   # pe@Wp.T + b (f32)
            ],
            out_specs=pl.BlockSpec((tile_m, d_model), lambda i: (i, 0)),
        ),
        compiler_params=pltpu.CompilerParams(
            dimension_semantics=("parallel",),   # row tiles split across TCs on v7x
            vmem_limit_bytes=32 * 1024 * 1024,
        ),
    )(x_rows, wx_t, pe_tile)

    # Free reshape back to (num_a, num_t, d_model); eval-mode dropout == identity.
    return out.reshape(num_a, num_t, d_model)


def reference(x, pe, fc_weight, fc_bias, t_offset=0):
    """Pure-JAX reference mirroring the PyTorch forward (eval mode), all f32."""
    num_a, num_t, d_model = x.shape
    pe_slice = pe[t_offset:t_offset + num_t, :]
    pos_enc = jnp.broadcast_to(pe_slice[None], (num_a, num_t, d_model))
    feat = jnp.concatenate([x, pos_enc], axis=-1)
    return feat @ fc_weight.T + fc_bias


if __name__ == "__main__":
    d_model = 32
    num_a = 4
    num_t = 8
    max_t_len = 200
    t_offset = 3

    key = jax.random.PRNGKey(0)
    kx, kw, kb = jax.random.split(key, 3)

    x = jax.random.normal(kx, (num_a, num_t, d_model), dtype=jnp.float32)

    # Deterministic parameter init (PyTorch Linear-style uniform bound).
    bound = 1.0 / np.sqrt(2 * d_model)
    fc_weight = jax.random.uniform(
        kw, (d_model, 2 * d_model), minval=-bound, maxval=bound, dtype=jnp.float32
    )
    fc_bias = jax.random.uniform(
        kb, (d_model,), minval=-bound, maxval=bound, dtype=jnp.float32
    )

    pe = build_pos_enc(max_t_len, d_model)

    out = positional_agent_encoding(x, pe, fc_weight, fc_bias, t_offset=t_offset)
    out = jax.block_until_ready(out)

    ref = reference(x, pe, fc_weight, fc_bias, t_offset=t_offset)
    # x / Wx go through the MXU in bfloat16 (f32 accumulation), so allow
    # bf16-level error against the all-f32 reference.
    np.testing.assert_allclose(np.asarray(out), np.asarray(ref), rtol=2e-2, atol=2e-2)

    print("KERNEL_OK")
</pallas_src>

<mosaic_0001>
module attributes {stable_mosaic.version = 11 : i64} {
  func.func @_pae_kernel(%arg0: i32, %arg1: memref<16x32xf32, #tpu.memory_space<vmem>>, %arg2: memref<32x32xbf16, #tpu.memory_space<vmem>>, %arg3: memref<16x32xf32, #tpu.memory_space<vmem>>, %arg4: memref<16x32xf32, #tpu.memory_space<vmem>>) attributes {dimension_semantics = [#tpu.dimension_semantics<parallel>], iteration_bounds = array<i64: 2>, scalar_prefetch = 0 : i64, scratch_operands = 0 : i64, tpu.core_type = #tpu.core_type<tc>, window_params = [{transform_indices = @transform_0, window_bounds = array<i64: 16, 32>}, {pipeline_mode = #tpu.pipeline_mode<synchronous>, transform_indices = @transform_1, window_bounds = array<i64: 32, 32>}, {pipeline_mode = #tpu.pipeline_mode<synchronous>, transform_indices = @transform_2, window_bounds = array<i64: 16, 32>}, {transform_indices = @transform_3, window_bounds = array<i64: 16, 32>}]} {
    %c0 = arith.constant 0 : index
    %c0_0 = arith.constant 0 : index
    %0 = vector.load %arg1[%c0, %c0_0] : memref<16x32xf32, #tpu.memory_space<vmem>>, vector<16x32xf32>
    %1 = arith.truncf %0 : vector<16x32xf32> to vector<16x32xbf16>
    %c0_1 = arith.constant 0 : index
    %c0_2 = arith.constant 0 : index
    %2 = vector.load %arg2[%c0_1, %c0_2] : memref<32x32xbf16, #tpu.memory_space<vmem>>, vector<32x32xbf16>
    %cst = arith.constant dense<0.000000e+00> : vector<16x32xf32>
    %3 = tpu.matmul %1, %2, %cst {dimension_numbers = #tpu.dot_dimension_numbers<[1], [0], [0], [1], [0, 0, 1, 1], [], []>} : vector<16x32xbf16>, vector<32x32xbf16>, vector<16x32xf32> -> vector<16x32xf32>
    %c0_3 = arith.constant 0 : index
    %c0_4 = arith.constant 0 : index
    %4 = vector.load %arg3[%c0_3, %c0_4] : memref<16x32xf32, #tpu.memory_space<vmem>>, vector<16x32xf32>
    %5 = arith.addf %3, %4 : vector<16x32xf32>
    %c0_5 = arith.constant 0 : index
    %c0_6 = arith.constant 0 : index
    %6 = vector.load %arg4[%c0_5, %c0_6] : memref<16x32xf32, #tpu.memory_space<vmem>>, vector<16x32xf32>
    tpu.vector_store %arg4[%c0_5, %c0_6], %5 {strides = array<i32>} : memref<16x32xf32, #tpu.memory_space<vmem>>, vector<16x32xf32>,
    return
  }
  func.func @transform_0(%arg0: i32) -> (i32, i32) {
    %c0_i32 = arith.constant 0 : i32
    %c0_i32_0 = arith.constant 0 : i32
    return %arg0, %c0_i32 : i32, i32
  }
  func.func @transform_1(%arg0: i32) -> (i32, i32) {
    %c0_i32 = arith.constant 0 : i32
    %c0_i32_0 = arith.constant 0 : i32
    %c0_i32_1 = arith.constant 0 : i32
    return %c0_i32, %c0_i32_0 : i32, i32
  }
  func.func @transform_2(%arg0: i32) -> (i32, i32) {
    %c0_i32 = arith.constant 0 : i32
    %c0_i32_0 = arith.constant 0 : i32
    %c0_i32_1 = arith.constant 0 : i32
    return %c0_i32, %c0_i32_0 : i32, i32
  }
  func.func @transform_3(%arg0: i32) -> (i32, i32) {
    %c0_i32 = arith.constant 0 : i32
    %c0_i32_0 = arith.constant 0 : i32
    return %arg0, %c0_i32 : i32, i32
  }
}

</mosaic_0001>

<bundles_post_ra>
// kernel: tpu_custom_call.1
= control target key start
LH: loop header
LB: loop body
LE: loop exit
PB: predicated region body
PF: predicated region fallthrough
CT: control target
= control target key end

     0   :  { %8 = vsyncpa [#allocation3], 0  ;;  %s820_s0 = inlined_call_operand.hbm [shape: f32[32,32], index: 0, kind: input, shape index: {}]   ;;  %s821_s1 = inlined_call_operand.hbm [shape: bf16[32,32], index: 1, kind: input, shape index: {}]   ;;  %s822_s2 = inlined_call_operand.hbm [shape: f32[16,32], index: 2, kind: input, shape index: {}]   ;;  %s823_s3 = inlined_call_operand.hbm [shape: f32[32,32], index: 3, kind: output, shape index: {}]  }
   0x1   :  { %10 = vsyncpa [#allocation3 + $0x1], 0 }
   0x2   :  { %11 = vsyncpa [#allocation6], 0 }
   0x3   :  { %12 = vsyncpa [#allocation4], 0 }
   0x4   :  { %14 = vsyncpa [#allocation4 + $0x1], 0  ;;  %s670_s12 = smov 0   ;;  %s672_s13 = smov 0  }
   0x5   :  { %s674_s14 = smov 0   ;;  %s676_s15 = smov 0  }
   0x6 LB: > { %s691_s16 = sadd.s32 4294967295, %s640_s15   ;;  %s376_s17 = sadd.s32 4294967294, %s640_s15   ;;  %s640_s15 = sphi %s676_s15, %s833_s15   ;;  %s636_s14 = sphi %s674_s14, %s832_s14   ;;  %s632_s13 = sphi %s672_s13, %s831_s13   ;;  %s628_s12 = sphi %s670_s12, %s830_s12  }
   0x7   : > { %p40_p0 = scmp.ne.s32.totalorder %s632_s13, %s628_s12  ;;  %p41_p1 = scmp.eq.s32.totalorder %s691_s16, 0 }
   0x8   : > { %p106_p2 = scmp.eq.s32.totalorder %s691_s16, 1  ;;  %p112_p3 = scmp.eq.s32.totalorder %s376_s17, 1 }
   0x9   : > { %p700_p4 = por %p41_p1, %p40_p0  ;;  %p377_p5 = scmp.ge.s32.totalorder %s640_s15, 1 }
   0xa   : > { %p705_p6 = por %p112_p3, %p40_p0  ;;  %p119_p7 = scmp.lt.s32.totalorder %s640_s15, 3 }
   0xb   : > { %s130_s22 = sshll.u32 %s821_s1, 4  ;;  %s642_s24 = smov [#allocation5]   ;;  %s131_s22 = int_to_ptr.hbm [resolvable:$true] %s130_s22 }
   0xc   : > { %p713_p8 = pnand %p377_p5, %p119_p7  ;;  %s132_s25 = sshll.u32 %s642_s24, 4  ;;  %s133_s25 = int_to_ptr.vmem [resolvable:$true] %s132_s25 }
   0xd   : > { %s144_s28 = sshll.u32 %s822_s2, 4  ;;  %s643_s29 = smov 64   ;;  %s145_s28 = int_to_ptr.hbm [resolvable:$true] %s144_s28 }
   0xe   : > { %p419_p9 = pneg %p713_p8  ;;  %s644_s30 = smov 4  }
   0xf   : > { %s645_s4 = smov [#allocation7]   ;;  %s646_s6 = smov 128  }
  0x10   : > { %p420_p10 = pnand %p419_p9, %p41_p1  ;;  %s146_s5 = sshll.u32 %s645_s4, 4  ;;  %s147_s5 = int_to_ptr.vmem [resolvable:$true] %s146_s5 }
  0x11   : > { %s647_s7 = smov 8   ;;  %s729_s8 = sadd.s32 1, %s640_s15  }
  0x12   : > { %422 = dma.hbm_to_vmem [thread:$0]  (!%p420_p10), %s131_s22, 256, %s133_s25, [#allocation6], %s643_s29, %s643_s29, %s644_s30  }
  0x13   : > { %425 = dma.hbm_to_vmem [thread:$0]  (!%p420_p10), %s145_s28, 256, %s147_s5, [#allocation6], %s646_s6, %s646_s6, %s647_s7  }
  0x14   : > { %s24_s9 = ssub.s32 %s640_s15, %s729_s8  ;;  %s27_s10 = sadd.s32 1, %s636_s14 }
  0x15   : > { %p25_p12 = scmp.eq.s32.totalorder %s24_s9, 0  ;;  %p34_p13 = scmp.ne.s32.totalorder %s636_s14, %s632_s13 }
  0x16   : > { %p35_p0 = scmp.eq.s32.totalorder %s640_s15, 0  ;;  %p436_p7 = scmp.lt.s32.totalorder %s640_s15, 2 }
  0x17   : > { %s738_s11 = scalar_select %p25_p12, %s636_s14, %s27_s10  }
  0x18   : > { %p36_p3 = por %p35_p0, %p34_p13  ;;  %p742_p5 = por %p106_p2, %p34_p13 }
  0x19   : > { %s160_s20 = sand.u32 1, %s636_s14   ;;  %s403_s22 = sshll.u32 %s640_s15, 4 }
  0x1a   : > { %s381_s21 = sshll.u32 %s160_s20, 4  ;;  %s169_s26 = scalar_lea.hbm %s820_s0, %s403_s22 }
  0x1b   : > { %s164_s27 = scalar_lea.vmem [#allocation2], %s381_s21  ;;  %s170_s29 = sshll.u32 %s169_s26, 4  ;;  %s171_s29 = int_to_ptr.hbm [resolvable:$true] %s170_s29 }
  0x1c   : > { %s172_s28 = sshll.u32 %s164_s27, 4  ;;  %p752_p9 = pnand %p436_p7, %p36_p3  ;;  %s173_s28 = int_to_ptr.vmem [resolvable:$true] %s172_s28 }
  0x1d   : > { %s161_s4 = scalar_lea.sflag [#allocation3], %s160_s20  ;;  %s540_s5 = sshra.s32 %s171_s29, 4  ;;  %s541_s5 = int_to_ptr.hbm [resolvable:$true] %s540_s5 }
  0x1e   : > { %s542_s9 = scalar_lea.hbm %s541_s5, 16  ;;  %p544_p10 = pneg %p752_p9 }
  0x1f   : > { %p543_p2 = scmp.ne.s32.totalorder %s541_s5, %s542_s9  ;;  %s547_s22 = scalar_lea.hbm %s820_s0, 32 }
  0x20   : > { %p548_p0 = scmp.lt.s32.totalorder %s541_s5, %s820_s0  ;;  %p549_p3 = scmp.lt.s32.totalorder %s547_s22, %s542_s9 }
  0x21   : > { %p545_p12 = pnand %p544_p10, %p543_p2 }
  0x22   : > { %p550_p7 = por %p549_p3, %p548_p0 }
  0x23   : > { %p546_p13 = pneg %p545_p12 }
  0x25   : > { %p551_p11 = pnand %p550_p7, %p546_p13 }
  0x27   : > { %554 = shalt.err (!%p551_p11)
}
  0x28   : > { %429 = dma.hbm_to_vmem [thread:$0]  (!%p752_p9), %s171_s29, 256, %s173_s28, %s161_s4, %s646_s6, %s646_s6, %s647_s7  }
  0x29   : > { %184 = sbr.rel (%p713_p8) target bundleno = 197 (0xc5), region = 32  ;;  %s772_s20 = sand.u32 (!%p713_p8), 1, %s632_s13  }
  0x2a   : > { %s385_s26 = sshll.u32 (!%p713_p8), %s772_s20, 4  ;;  %s187_s27 = scalar_lea.sflag (!%p713_p8), [#allocation3], %s772_s20 }
  0x2b   : > { %s190_s5 = scalar_lea.vmem (!%p713_p8), [#allocation2], %s385_s26 }
  0x2e   : > { %615 = dma.done.wait (%p700_p4), %s187_s27, 256  }
  0x2f   : > { %617 = vsyncadd (%p700_p4), %s187_s27, 4294967040 }
  0x30   : > { %619 = dma.done.wait (%p41_p1), [#allocation6], 512  }
  0x31   : > { %621 = vsyncadd (%p41_p1), [#allocation6], 4294966784  ;;  %v405_v0 = vld [vmem:[#allocation5 + $0x8] sm:$0xff]  ;;  %v404_v1 = vld [vmem:[#allocation5] sm:$0xff]  ;;  %vm248_vm0 = vcmask 261120   ;;  %s406_s18 = sshll.u32 %s691_s16, 4 }
  0x32   : > { %258 = vmatpush.bf16.msra.mxu0 %v405_v0  ;;  %v227_v2 = vld [vmem:[%s190_s5] sm:$0xff]  ;;  %v228_v3 = vld [vmem:[%s190_s5 + $0x8] sm:$0xff]  ;;  %s280_s7 = scalar_lea.hbm %s823_s3, %s406_s18  ;;  %s223_s28 = scalar_lea.vmem [#allocation8], %s385_s26 }
  0x33   : > { %v229_v4 = vpack.c.bf16 %v228_v3, %v227_v2  ;;  %v234_v5 = vld [vmem:[#allocation7] sm:$0xff]  ;;  %s281_s29 = sshll.u32 %s223_s28, 4  ;;  %s283_s30 = sshll.u32 %s280_s7, 4  ;;  %v235_v8 = vld [vmem:[#allocation7 + $0x8] sm:$0xff]  ;;  %s282_s29 = int_to_ptr.vmem [resolvable:$true] %s281_s29  ;;  %s284_s30 = int_to_ptr.hbm [resolvable:$true] %s283_s30 }
  0x34   : > { %s269_s16 = scalar_lea.sflag [#allocation4], %s772_s20  ;;  %s584_s4 = sshra.s32 %s284_s30, 4  ;;  %s585_s4 = int_to_ptr.hbm [resolvable:$true] %s584_s4 }
  0x35   : > { %s586_s9 = scalar_lea.hbm %s585_s4, 16  ;;  %s590_s22 = scalar_lea.hbm %s823_s3, 32 }
  0x36   : > { %259 = vmatpush.bf16.msra.mxu0 %v404_v1  ;;  %p587_p1 = scmp.ne.s32.totalorder %s585_s4, %s586_s9  ;;  %p591_p11 = scmp.lt.s32.totalorder %s585_s4, %s823_s3 }
  0x37   : > { %p592_p9 = scmp.lt.s32.totalorder %s590_s22, %s586_s9 }
  0x38   : > { %p588_p4 = pnand %p587_p1, %p742_p5 }
  0x39   : > { %397 = vmatmul.msk.bf16.vlgmr.msra.gmra.mxu0 %vm248_vm0, %v229_v4  ;;  %p593_p2 = por %p592_p9, %p591_p11 }
  0x3a   : > { %p589_p8 = pneg %p588_p4 }
  0x3c   : > { %p594_p10 = pnand %p593_p2, %p589_p8 }
  0xb6   : > { %v261_v6 = vpop.f32.mrf.mxu0 }
  0xb7   : > { %v262_v7 = vadd.f32 %v261_v6, %v234_v5 }
  0xb9   : > { %266 = vst.msk [vmem:[%s223_s28] sm:$0xff] %vm248_vm0, %v262_v7 }
  0xbe   : > { %v263_v9 = vpop.f32.mrf.mxu0 }
  0xbf   : > { %v264_v10 = vadd.f32 %v263_v9, %v235_v8 }
  0xc1   : > { %267 = vst.msk [vmem:[%s223_s28 + $0x8] sm:$0xff] %vm248_vm0, %v264_v10 }
  0xc2   : > { %597 = shalt.err (!%p594_p10)
}
  0xc3   : > { %s648_s20 = smov 128   ;;  %s649_s26 = smov 8  }
  0xc4   : > { %417 = dma.vmem_to_hbm [thread:$0]  (%p742_p5), %s282_s29, 256, %s284_s30, %s269_s16, %s648_s20, %s648_s20, %s649_s26  }
  0xc5 PF: > { %s298_s27 = sand.u32 1, %s628_s12   ;;  %p829_p12 = scmp.ge.s32.totalorder %s640_s15, 2 }
  0xc6   : > { %s299_s5 = scalar_lea.sflag [#allocation4], %s298_s27 }
  0xc7   : > { %p431_p13 = pnand %p829_p12, %p705_p6 }
  0xc9   : > { %p432_p0 = pneg %p431_p13 }
  0xcb   : > { %623 = dma.done.wait (%p432_p0), %s299_s5, 256  }
  0xcc   : > { %625 = vsyncadd (%p432_p0), %s299_s5, 4294967040  ;;  %p17_p3 = scmp.ge.s32.totalorder %s729_s8, 4   ;;  %s830_s12 = smov %s632_s13 }
  0xcd   : > { %s831_s13 = smov %s636_s14  ;;  %s832_s14 = smov %s738_s11 }
  0xce   : > { %s833_s15 = smov %s729_s8  ;;  %19 = sbr.rel (!%p17_p3) target bundleno = 6 (0x6), region = 85 }
  0xd3   :  { %305 = vsyncpa [#allocation3], 1 }
  0xd4   :  { %307 = vsyncpa [#allocation3 + $0x1], 1 }
  0xd5   :  { %308 = vsyncpa [#allocation6], 1 }
  0xd6   :  { %309 = vsyncpa [#allocation4], 1 }
  0xd7   :  { %311 = vsyncpa [#allocation4 + $0x1], 1 }

</bundles_post_ra>
